<compile_context>
chip_gen: v7x
topology: tpu7x:2x2x1
jax: 0.10.0
libtpu: 0.0.40
codegen_flags: <defaults>
</compile_context>

<pallas_src>
import functools

import jax
import jax.numpy as jnp
from jax.experimental import pallas as pl
from jax.experimental.pallas import tpu as pltpu

_LANES = 128
_MiB = 1024 * 1024


def _sublane(dtype) -> int:
    # Packed-sublane granularity: 8 rows for 4-byte, 16 for 2-byte, 32 for 1-byte.
    return max(8, 32 // jnp.dtype(dtype).itemsize)


def _device_tiling():
    """Returns (per-buffer tile bytes, vmem_limit_bytes or None) per TPU gen."""
    try:
        kind = jax.devices()[0].device_kind.lower()
    except Exception:  # pragma: no cover - defensive, keep a safe default
        kind = ""
    if "v5" in kind:
        # v5e: 16 MiB scoped-VMEM default; 2 MiB/buffer -> 8 MiB pipelined total.
        return 2 * _MiB, None
    if "v6" in kind:
        # v6e: 32 MiB default; 4 MiB/buffer -> 16 MiB pipelined total.
        return 4 * _MiB, None
    if "v7" in kind or "7x" in kind:
        # v7x: 3.2 TB/s HBM per TC, 64 MiB physical VMEM; 8 MiB/buffer ->
        # 32 MiB pipelined, raise scoped limit to 48 MiB for headroom.
        return 8 * _MiB, 48 * _MiB
    # Unknown generation: conservative.
    return 2 * _MiB, None


def _softclip_kernel(x_ref, o_ref, *, inv_bound, exact_divide):
    # Compute in f32 regardless of storage dtype (free: kernel is HBM-bound).
    x = x_ref[...].astype(jnp.float32)
    # y = x / (1 + |x| * |1/bound|)  ==  x / (1 + |x / bound|)  (<=1 ulp diff).
    denom = 1.0 + jnp.abs(x) * inv_bound
    if exact_divide:
        y = x / denom
    else:
        # Low-precision outputs: EUP approx reciprocal, frees VALU slots (v7x).
        y = x * pl.reciprocal(denom, approx=True)
    o_ref[...] = y.astype(o_ref.dtype)


def _softclip_2d(x2d, *, inv_bound, out_dtype):
    rows = x2d.shape[0]
    itemsize = jnp.dtype(out_dtype).itemsize
    sub = _sublane(out_dtype)
    tile_bytes, vmem_limit = _device_tiling()

    # Rows per tile from the byte target (dtype-aware).
    tr = max(sub, tile_bytes // (_LANES * itemsize))
    # Keep >= ~4 grid steps when the slab is large enough (megacore sharding on
    # v7x needs >=2 steps; >=4 also restores DMA/compute overlap).
    quarter = ((rows // 4) // sub) * sub
    if quarter >= sub:
        tr = min(tr, quarter)
    # Clamp to the slab and align to the packed-sublane multiple. The partial
    # last block (rows % tr != 0) is masked by Pallas.
    tr = min(tr, rows)
    tr = max(sub, (tr // sub) * sub)
    if rows < sub:
        tr = rows  # full-extent block is always legal

    kernel = functools.partial(
        _softclip_kernel, inv_bound=inv_bound, exact_divide=itemsize >= 4
    )

    # NOTE: input_output_aliases={0: 0} would halve HBM footprint when callers
    # donate the input, but forces a copy otherwise — intentionally not set.
    return pl.pallas_call(
        kernel,
        out_shape=jax.ShapeDtypeStruct((rows, _LANES), out_dtype),
        grid_spec=pltpu.PrefetchScalarGridSpec(
            num_scalar_prefetch=0,
            grid=(pl.cdiv(rows, tr),),
            in_specs=[pl.BlockSpec((tr, _LANES), lambda i: (i, 0))],
            out_specs=pl.BlockSpec((tr, _LANES), lambda i: (i, 0)),
        ),
        compiler_params=pltpu.CompilerParams(
            dimension_semantics=("parallel",),
            vmem_limit_bytes=vmem_limit,
        ),
    )(x2d)


@functools.partial(jax.jit, static_argnames=("bound",))
def softclip(x, bound: float = 1.0):
    """Applies x / (1 + |x / bound|) elementwise via a Pallas TPU kernel."""
    orig_shape = x.shape
    dtype = x.dtype
    n = x.size

    # |1/bound| matches torch's x/(1+abs(x/bound)) for bound<0 (denominator is
    # always >= 1); bound==0 degrades to the same inf/nan pattern as torch
    # without raising at trace time.
    inv_bound = abs(1.0 / float(bound)) if bound != 0 else float("inf")

    def _jnp_softclip(v):
        vf = v.astype(jnp.float32)
        return (vf / (1.0 + jnp.abs(vf) * inv_bound)).astype(dtype)

    xflat = x.reshape(-1)
    n_main = (n // _LANES) * _LANES

    if n_main == 0:
        # Fewer than 128 elements: plain XLA, not worth a kernel launch.
        return _jnp_softclip(xflat).reshape(orig_shape)

    x2d = xflat[:n_main].reshape(n_main // _LANES, _LANES)
    y_main = _softclip_2d(x2d, inv_bound=inv_bound, out_dtype=dtype).reshape(-1)

    if n_main == n:
        # Common, fully lane-aligned case: zero-copy reshape in and out.
        return y_main.reshape(orig_shape)

    # Ragged tail (< 128 elements): tiny jnp compute, stitched onto the prefix.
    y_tail = _jnp_softclip(xflat[n_main:])
    return jnp.concatenate([y_main, y_tail]).reshape(orig_shape)


if __name__ == "__main__":
    key = jax.random.PRNGKey(0)

    # Shape consistent with a generic NCHW tensor: batch=2, channels=4, 16x16.
    x = jax.random.normal(key, (2, 4, 16, 16), dtype=jnp.float32) * 3.0
    bound = 1.0

    y = jax.block_until_ready(softclip(x, bound=bound))
    y_ref = x / (1.0 + jnp.abs(x / bound))
    assert y.shape == x.shape and y.dtype == x.dtype
    assert jnp.allclose(y, y_ref, atol=1e-6, rtol=1e-6), "mismatch vs reference"

    # Ragged shape: 128-aligned prefix through the kernel + <128-element tail.
    x2 = jax.random.normal(jax.random.PRNGKey(1), (3, 50, 9), dtype=jnp.float32)
    y2 = jax.block_until_ready(softclip(x2, bound=2.5))
    y2_ref = x2 / (1.0 + jnp.abs(x2 / 2.5))
    assert y2.shape == x2.shape
    assert jnp.allclose(y2, y2_ref, atol=1e-6, rtol=1e-6), "mismatch (ragged path)"

    # Sub-128-element input: pure-jnp fallback path.
    x3 = jax.random.normal(jax.random.PRNGKey(2), (3, 5, 7), dtype=jnp.float32)
    y3 = jax.block_until_ready(softclip(x3, bound=0.7))
    y3_ref = x3 / (1.0 + jnp.abs(x3 / 0.7))
    assert jnp.allclose(y3, y3_ref, atol=1e-6, rtol=1e-6), "mismatch (tiny path)"

    # bf16 exercises the f32-internal math + approx-reciprocal path.
    x4 = (jax.random.normal(jax.random.PRNGKey(3), (8, 512)) * 2.0).astype(jnp.bfloat16)
    y4 = jax.block_until_ready(softclip(x4, bound=1.5))
    y4_ref = (x4.astype(jnp.float32) / (1.0 + jnp.abs(x4.astype(jnp.float32) / 1.5))).astype(jnp.bfloat16)
    assert y4.dtype == jnp.bfloat16
    assert jnp.allclose(
        y4.astype(jnp.float32), y4_ref.astype(jnp.float32), atol=2e-2, rtol=2e-2
    ), "mismatch (bf16 path)"

    print("KERNEL_OK")
</pallas_src>

<mosaic_0001>
module attributes {stable_mosaic.version = 11 : i64} {
  func.func @_softclip_kernel(%arg0: i32, %arg1: memref<16x128xf32, #tpu.memory_space<vmem>>, %arg2: memref<16x128xf32, #tpu.memory_space<vmem>>) attributes {dimension_semantics = [#tpu.dimension_semantics<parallel>], iteration_bounds = array<i64: 1>, scalar_prefetch = 0 : i64, scratch_operands = 0 : i64, tpu.core_type = #tpu.core_type<tc>, window_params = [{transform_indices = @transform_0, window_bounds = array<i64: 16, 128>}, {transform_indices = @transform_1, window_bounds = array<i64: 16, 128>}]} {
    %c0 = arith.constant 0 : index
    %c0_0 = arith.constant 0 : index
    %0 = vector.load %arg1[%c0, %c0_0] : memref<16x128xf32, #tpu.memory_space<vmem>>, vector<16x128xf32>
    %1 = math.absf %0 : vector<16x128xf32>
    %cst = arith.constant 1.000000e+00 : f32
    %2 = vector.broadcast %cst : f32 to vector<16x128xf32>
    %3 = arith.mulf %1, %2 : vector<16x128xf32>
    %cst_1 = arith.constant 1.000000e+00 : f32
    %4 = vector.broadcast %cst_1 : f32 to vector<16x128xf32>
    %5 = arith.addf %4, %3 : vector<16x128xf32>
    %6 = arith.divf %0, %5 : vector<16x128xf32>
    %c0_2 = arith.constant 0 : index
    %c0_3 = arith.constant 0 : index
    %7 = vector.load %arg2[%c0_2, %c0_3] : memref<16x128xf32, #tpu.memory_space<vmem>>, vector<16x128xf32>
    tpu.vector_store %arg2[%c0_2, %c0_3], %6 {strides = array<i32>} : memref<16x128xf32, #tpu.memory_space<vmem>>, vector<16x128xf32>,
    return
  }
  func.func @transform_0(%arg0: i32) -> (i32, i32) {
    %c0_i32 = arith.constant 0 : i32
    %c0_i32_0 = arith.constant 0 : i32
    return %arg0, %c0_i32 : i32, i32
  }
  func.func @transform_1(%arg0: i32) -> (i32, i32) {
    %c0_i32 = arith.constant 0 : i32
    %c0_i32_0 = arith.constant 0 : i32
    return %arg0, %c0_i32 : i32, i32
  }
}

</mosaic_0001>

<bundles_post_ra>
// kernel: softclip.1
= control target key start
LH: loop header
LB: loop body
LE: loop exit
PB: predicated region body
PF: predicated region fallthrough
CT: control target
= control target key end

     0   :  { %s50_s0 = inlined_call_operand.vmem [shape: f32[16,128], index: 0, kind: input, shape index: {}]   ;;  %s51_s1 = inlined_call_operand.vmem [shape: f32[16,128], index: 1, kind: output, shape index: {}]  }
   0x1   :  { %v8_v0 = vld [vmem:[%s50_s0] sm:$0xff]  ;;  %v9_v1 = vld [vmem:[%s50_s0 + $0x8] sm:$0xff] }
   0x2   :  { %v10_v2 = vand.u32 2147483647, %v8_v0  ;;  %v11_v3 = vand.u32 2147483647, %v9_v1 }
   0x4   :  { %v12_v4 = vadd.f32 1.0, %v10_v2  ;;  %v13_v5 = vadd.f32 1.0, %v11_v3 }
   0x6   :  { %24 = vrcp.f32 %v12_v4 }
   0x7   :  { %26 = vrcp.f32 %v13_v5 }
  0x10   :  { %v25_v6 = vpop.eup %24 }
  0x11   :  { %v27_v7 = vpop.eup %26  ;;  %v15_v8 = vmul.f32 %v25_v6, %v8_v0 }
  0x12   :  { %v17_v9 = vmul.f32 %v27_v7, %v9_v1 }
  0x13   :  { %18 = vst [vmem:[%s51_s1] sm:$0xff] %v15_v8 }
  0x14   :  { %19 = vst [vmem:[%s51_s1 + $0x8] sm:$0xff] %v17_v9 }

</bundles_post_ra>
